<compile_context>
chip_gen: v7x
topology: tpu7x:2x2x1
jax: 0.10.0
libtpu: 0.0.40
codegen_flags: <defaults>
</compile_context>

<pallas_src>
import jax
import jax.numpy as jnp
from jax.experimental import pallas as pl
from jax.experimental.pallas import tpu as pltpu


def _rvh_kernel(x_ref, w1_ref, w2_ref, w3_ref, w4_ref, o_ref, acc_ref):
    """One (batch-block g, pixel-tile t) grid step.

    x_ref  : (B_TILE, C, TILE_P) activations (matmul dtype)
    w*_ref : folded conv weights (C_out, C_in); w4_ref is (8, 1) f32 and already
             contains the depthwise scale d4 AND the 1/(H*W) pooling factor.
    o_ref  : (B_TILE, 1, 1)      tanh(value) per batch, written on the last tile
    acc_ref: (8, B_TILE) f32     running per-batch sums of block-3 activations
    """
    t = pl.program_id(1)
    b_tile = x_ref.shape[0]

    @pl.when(t == 0)
    def _init():
        acc_ref[...] = jnp.zeros_like(acc_ref)

    w1 = w1_ref[...]
    w2 = w2_ref[...]
    w3 = w3_ref[...]

    parts = []
    for b in range(b_tile):                       # static, unrolled batch loop
        xb = x_ref[b]                             # (C, TILE_P)
        # Block 1: 1x1 conv C -> 256 (depthwise scale folded in) -> ReLU
        h = jnp.dot(w1, xb, preferred_element_type=jnp.float32)
        h = jnp.maximum(h, 0.0).astype(w2.dtype)
        # Block 2: 256 -> 64 -> ReLU
        h = jnp.dot(w2, h, preferred_element_type=jnp.float32)
        h = jnp.maximum(h, 0.0).astype(w3.dtype)
        # Block 3: 64 -> 8 -> ReLU
        h = jnp.dot(w3, h, preferred_element_type=jnp.float32)
        h = jnp.maximum(h, 0.0)                   # (8, TILE_P) f32
        # Partial AdaptiveAvgPool3d(1): sum this tile's pixels (XLU lane reduce).
        parts.append(jnp.sum(h, axis=-1, keepdims=True))     # (8, 1)

    acc_ref[...] += jnp.concatenate(parts, axis=-1)           # (8, B_TILE)

    @pl.when(t == pl.num_programs(1) - 1)
    def _finalize():
        pooled = acc_ref[...]                     # (8, B_TILE); 1/P already in w4
        w4 = w4_ref[...]                          # (8, 1) f32
        for b in range(b_tile):
            vb = jnp.sum(w4 * pooled[:, b:b + 1], axis=0, keepdims=True)  # (1, 1)
            o_ref[b] = jnp.tanh(vb)


def _default_max_tile_p():
    """v5e (1 vst slot, no bf16 VPU) prefers smaller pixel tiles."""
    try:
        kind = jax.devices()[0].device_kind.lower()
    except Exception:
        return 1024
    if "v5e" in kind or "v5 lite" in kind or "v5litepod" in kind:
        return 512
    return 1024


def _pick_tile_p(p_pad, max_tile):
    """Largest multiple of 128 that divides p_pad (p_pad is a multiple of 128)."""
    t = max(128, min(p_pad, (max_tile // 128) * 128))
    while p_pad % t != 0:
        t -= 128
    return t


def _pick_b_tile(n, max_b=8):
    """Largest divisor of n (<= max_b) keeping the batch grid axis >= 2 (v7x TCs)."""
    best = 1
    for b in range(1, min(n, max_b) + 1):
        if n % b == 0 and (n // b >= 2 or n == 1):
            best = b
    return best


def reverse_value_head(x_nchw, raw_params, *, tile_p=None, b_tile=None,
                       matmul_dtype=jnp.bfloat16, x_buffers=None):
    """raw_params: [(w_i (Cout,Cin), d_i (Cout,))] for the 4 conv blocks."""
    N, C, H, W = x_nchw.shape
    P = H * W
    P_pad = ((P + 127) // 128) * 128              # lane-align the pixel axis

    # NCHW -> (N, C, P): channels-first stays contiguous -> free reshape.
    x3 = x_nchw.reshape(N, C, P).astype(matmul_dtype)
    if P_pad != P:
        # Exact: bias-free convs map zero pixels to zero, ReLU(0)=0, so padded
        # lanes add 0 to the pooling accumulator.
        x3 = jnp.pad(x3, ((0, 0), (0, 0), (0, P_pad - P)))

    if tile_p is None or P_pad % tile_p != 0 or tile_p % 128 != 0:
        tile_p = _pick_tile_p(P_pad, _default_max_tile_p())
    n_tiles = P_pad // tile_p

    if b_tile is None or b_tile < 1 or N % b_tile != 0:
        b_tile = _pick_b_tile(N)
    n_bblocks = N // b_tile

    # Fold each depthwise per-channel scale into its conv weight (row scale);
    # fold the 1/(H*W) pooling mean (true pixel count, NOT P_pad) into w4.
    (w1, d1), (w2, d2), (w3, d3), (w4, d4) = raw_params
    w1 = (w1 * d1[:, None]).astype(matmul_dtype)                  # (256, C)
    w2 = (w2 * d2[:, None]).astype(matmul_dtype)                  # (64, 256)
    w3 = (w3 * d3[:, None]).astype(matmul_dtype)                  # (8, 64)
    w4 = ((w4 * d4[:, None]) * (1.0 / float(P))).reshape(8, 1).astype(jnp.float32)

    x_spec_kwargs = {}
    if x_buffers is not None and x_buffers != 2:
        # Deeper input pipeline for DMA-latency-bound (tiny-tile) cases.
        x_spec_kwargs["pipeline_mode"] = pl.Buffered(x_buffers)

    def const_spec(shape):
        return pl.BlockSpec(shape, lambda g, t: (0, 0))           # resident weights

    out = pl.pallas_call(
        _rvh_kernel,
        out_shape=jax.ShapeDtypeStruct((N, 1, 1), jnp.float32),
        grid_spec=pltpu.PrefetchScalarGridSpec(
            num_scalar_prefetch=0,
            grid=(n_bblocks, n_tiles),            # pixel-tile reduction axis LAST
            in_specs=[
                pl.BlockSpec((b_tile, C, tile_p), lambda g, t: (g, 0, t),
                             **x_spec_kwargs),
                const_spec(w1.shape),
                const_spec(w2.shape),
                const_spec(w3.shape),
                const_spec(w4.shape),
            ],
            out_specs=pl.BlockSpec((b_tile, 1, 1), lambda g, t: (g, 0, 0)),
            scratch_shapes=[pltpu.VMEM((8, b_tile), jnp.float32)],
        ),
        compiler_params=pltpu.CompilerParams(
            dimension_semantics=("parallel", "arbitrary"),
            vmem_limit_bytes=32 * 1024 * 1024,    # within v7x's 64 MiB physical VMEM
        ),
    )(x3, w1, w2, w3, w4)
    return out.reshape(N, 1)                      # matches Flatten() output


def reverse_value_head_reference(x_nchw, raw_params):
    """Pure-JAX f32 reference following the PyTorch module layer-by-layer."""
    h = x_nchw.astype(jnp.float32)
    n_blocks = len(raw_params)
    for i, (w, d) in enumerate(raw_params):
        h = jnp.einsum('oc,nchw->nohw', w, h,
                       precision=jax.lax.Precision.HIGHEST)       # 1x1 conv, bias=False
        h = h * d[None, :, None, None]                            # depthwise 1x1 (scale)
        if i < n_blocks - 1:                                      # no act when filters == 1
            h = jnp.maximum(h, 0.0)
    pooled = jnp.mean(h, axis=(1, 2, 3))[:, None]                 # AdaptiveAvgPool3d(1)+Flatten
    return jnp.tanh(pooled)


def init_raw_params(width, key):
    """Deterministic synthetic weights matching the module's shapes."""
    conv_filters = [256, 64, 8, 1]
    params = []
    cin = width
    keys = jax.random.split(key, 2 * len(conv_filters))
    for i, cout in enumerate(conv_filters):
        kw, kd = keys[2 * i], keys[2 * i + 1]
        w = jax.random.normal(kw, (cout, cin), jnp.float32) * (1.0 / (cin ** 0.5))
        d = jax.random.normal(kd, (cout,), jnp.float32) * 0.5
        params.append((w, d))
        cin = cout
    return params


if __name__ == "__main__":
    key = jax.random.PRNGKey(0)
    kx, kp, kx2 = jax.random.split(key, 3)

    # --- Config A: 16x16 board (P=256, lane-aligned), batch 2, width 32 -------
    N, width, H, W = 2, 32, 16, 16
    x = jax.random.normal(kx, (N, width, H, W), jnp.float32)
    raw_params = init_raw_params(width, kp)
    ref = reverse_value_head_reference(x, raw_params)

    # f32 matmul path, tile_p=128 forces a 2-step pixel reduction (tight check).
    out_f32 = jax.block_until_ready(
        reverse_value_head(x, raw_params, tile_p=128, matmul_dtype=jnp.float32))
    assert out_f32.shape == (N, 1), out_f32.shape
    assert bool(jnp.max(jnp.abs(out_f32 - ref)) < 5e-3), (out_f32, ref)

    # bf16 MXU-input path (perf config), defaults pick tile_p / b_tile (loose check).
    out_bf16 = jax.block_until_ready(
        reverse_value_head(x, raw_params, matmul_dtype=jnp.bfloat16))
    assert out_bf16.shape == (N, 1), out_bf16.shape
    assert bool(jnp.all(jnp.isfinite(out_bf16))), "non-finite output"
    assert bool(jnp.all(jnp.abs(out_bf16) <= 1.0)), "tanh range violated"
    assert bool(jnp.max(jnp.abs(out_bf16 - ref)) < 5e-2), (out_bf16, ref)

    # --- Config B: 13x13 board (P=169 -> padded to 256), batch 4, B_TILE=2 ----
    # Exercises lane padding + batch blocking + multi-tile reduction together.
    N2 = 4
    x2 = jax.random.normal(kx2, (N2, width, 13, 13), jnp.float32)
    ref2 = reverse_value_head_reference(x2, raw_params)
    out2 = jax.block_until_ready(
        reverse_value_head(x2, raw_params, tile_p=128, b_tile=2,
                           matmul_dtype=jnp.float32))
    assert out2.shape == (N2, 1), out2.shape
    assert bool(jnp.max(jnp.abs(out2 - ref2)) < 5e-3), (out2, ref2)

    print("KERNEL_OK")
</pallas_src>

<mosaic_0001>
module attributes {stable_mosaic.version = 11 : i64} {
  func.func @_rvh_kernel(%arg0: i32, %arg1: i32, %arg2: memref<1x32x128xf32, #tpu.memory_space<vmem>>, %arg3: memref<256x32xf32, #tpu.memory_space<vmem>>, %arg4: memref<64x256xf32, #tpu.memory_space<vmem>>, %arg5: memref<8x64xf32, #tpu.memory_space<vmem>>, %arg6: memref<8x1xf32, #tpu.memory_space<vmem>>, %arg7: memref<1x1x1xf32, #tpu.memory_space<vmem>>, %arg8: memref<8x1xf32, #tpu.memory_space<vmem>>) attributes {dimension_semantics = [#tpu.dimension_semantics<parallel>, #tpu.dimension_semantics<arbitrary>], iteration_bounds = array<i64: 2, 2>, scalar_prefetch = 0 : i64, scratch_operands = 1 : i64, tpu.core_type = #tpu.core_type<tc>, window_params = [{transform_indices = @transform_0, window_bounds = array<i64: 1, 32, 128>}, {pipeline_mode = #tpu.pipeline_mode<synchronous>, transform_indices = @transform_1, window_bounds = array<i64: 256, 32>}, {pipeline_mode = #tpu.pipeline_mode<synchronous>, transform_indices = @transform_2, window_bounds = array<i64: 64, 256>}, {pipeline_mode = #tpu.pipeline_mode<synchronous>, transform_indices = @transform_3, window_bounds = array<i64: 8, 64>}, {pipeline_mode = #tpu.pipeline_mode<synchronous>, transform_indices = @transform_4, window_bounds = array<i64: 8, 1>}, {transform_indices = @transform_5, window_bounds = array<i64: 1, 1, 1>}]} {
    %c0_i32 = arith.constant 0 : i32
    %0 = arith.cmpi eq, %arg1, %c0_i32 : i32
    %1 = arith.extui %0 : i1 to i32
    %c0_i32_0 = arith.constant 0 : i32
    %2 = arith.cmpi ne, %1, %c0_i32_0 : i32
    scf.if %2 {
      %cst_20 = arith.constant 0.000000e+00 : f32
      %25 = vector.broadcast %cst_20 : f32 to vector<8x1xf32>
      %c0_21 = arith.constant 0 : index
      %c0_22 = arith.constant 0 : index
      %26 = vector.load %arg8[%c0_21, %c0_22] : memref<8x1xf32, #tpu.memory_space<vmem>>, vector<8x1xf32>
      tpu.vector_store %arg8[%c0_21, %c0_22], %25 {strides = array<i32>} : memref<8x1xf32, #tpu.memory_space<vmem>>, vector<8x1xf32>,
    } else {
    }
    %c0 = arith.constant 0 : index
    %c0_1 = arith.constant 0 : index
    %3 = vector.load %arg3[%c0, %c0_1] : memref<256x32xf32, #tpu.memory_space<vmem>>, vector<256x32xf32>
    %c0_2 = arith.constant 0 : index
    %c0_3 = arith.constant 0 : index
    %4 = vector.load %arg4[%c0_2, %c0_3] : memref<64x256xf32, #tpu.memory_space<vmem>>, vector<64x256xf32>
    %c0_4 = arith.constant 0 : index
    %c0_5 = arith.constant 0 : index
    %5 = vector.load %arg5[%c0_4, %c0_5] : memref<8x64xf32, #tpu.memory_space<vmem>>, vector<8x64xf32>
    %c0_6 = arith.constant 0 : index
    %c0_7 = arith.constant 0 : index
    %c0_8 = arith.constant 0 : index
    %6 = vector.load %arg2[%c0_6, %c0_7, %c0_8] : memref<1x32x128xf32, #tpu.memory_space<vmem>>, vector<1x32x128xf32>
    %7 = vector.shape_cast %6 : vector<1x32x128xf32> to vector<32x128xf32>
    %cst = arith.constant dense<0.000000e+00> : vector<256x128xf32>
    %8 = tpu.matmul %3, %7, %cst {dimension_numbers = #tpu.dot_dimension_numbers<[1], [0], [0], [1], [0, 0, 1, 1], [], []>} : vector<256x32xf32>, vector<32x128xf32>, vector<256x128xf32> -> vector<256x128xf32>
    %cst_9 = arith.constant 0.000000e+00 : f32
    %9 = vector.broadcast %cst_9 : f32 to vector<256x128xf32>
    %10 = arith.maximumf %8, %9 : vector<256x128xf32>
    %cst_10 = arith.constant dense<0.000000e+00> : vector<64x128xf32>
    %11 = tpu.matmul %4, %10, %cst_10 {dimension_numbers = #tpu.dot_dimension_numbers<[1], [0], [0], [1], [0, 0, 1, 1], [], []>} : vector<64x256xf32>, vector<256x128xf32>, vector<64x128xf32> -> vector<64x128xf32>
    %cst_11 = arith.constant 0.000000e+00 : f32
    %12 = vector.broadcast %cst_11 : f32 to vector<64x128xf32>
    %13 = arith.maximumf %11, %12 : vector<64x128xf32>
    %cst_12 = arith.constant dense<0.000000e+00> : vector<8x128xf32>
    %14 = tpu.matmul %5, %13, %cst_12 {dimension_numbers = #tpu.dot_dimension_numbers<[1], [0], [0], [1], [0, 0, 1, 1], [], []>} : vector<8x64xf32>, vector<64x128xf32>, vector<8x128xf32> -> vector<8x128xf32>
    %cst_13 = arith.constant 0.000000e+00 : f32
    %15 = vector.broadcast %cst_13 : f32 to vector<8x128xf32>
    %16 = arith.maximumf %14, %15 : vector<8x128xf32>
    %cst_14 = arith.constant dense<0.000000e+00> : vector<8xf32>
    %17 = vector.multi_reduction <add>, %16, %cst_14 [1] : vector<8x128xf32> to vector<8xf32>
    %18 = vector.shape_cast %17 : vector<8xf32> to vector<8x1xf32>
    %c0_15 = arith.constant 0 : index
    %c0_16 = arith.constant 0 : index
    %19 = vector.load %arg8[%c0_15, %c0_16] : memref<8x1xf32, #tpu.memory_space<vmem>>, vector<8x1xf32>
    %20 = arith.addf %19, %18 : vector<8x1xf32>
    %c0_17 = arith.constant 0 : index
    %c0_18 = arith.constant 0 : index
    %21 = vector.load %arg8[%c0_17, %c0_18] : memref<8x1xf32, #tpu.memory_space<vmem>>, vector<8x1xf32>
    tpu.vector_store %arg8[%c0_17, %c0_18], %20 {strides = array<i32>} : memref<8x1xf32, #tpu.memory_space<vmem>>, vector<8x1xf32>,
    %c1_i32 = arith.constant 1 : i32
    %22 = arith.cmpi eq, %arg1, %c1_i32 : i32
    %23 = arith.extui %22 : i1 to i32
    %c0_i32_19 = arith.constant 0 : i32
    %24 = arith.cmpi ne, %23, %c0_i32_19 : i32
    scf.if %24 {
      %c0_20 = arith.constant 0 : index
      %c0_21 = arith.constant 0 : index
      %25 = vector.load %arg8[%c0_20, %c0_21] : memref<8x1xf32, #tpu.memory_space<vmem>>, vector<8x1xf32>
      %c0_22 = arith.constant 0 : index
      %c0_23 = arith.constant 0 : index
      %26 = vector.load %arg6[%c0_22, %c0_23] : memref<8x1xf32, #tpu.memory_space<vmem>>, vector<8x1xf32>
      %27 = arith.mulf %26, %25 : vector<8x1xf32>
      %cst_24 = arith.constant dense<0.000000e+00> : vector<1xf32>
      %28 = vector.multi_reduction <add>, %27, %cst_24 [0] : vector<8x1xf32> to vector<1xf32>
      %29 = vector.shape_cast %28 : vector<1xf32> to vector<1x1xf32>
      %30 = math.tanh %29 : vector<1x1xf32>
      %c0_25 = arith.constant 0 : index
      %c0_26 = arith.constant 0 : index
      %c0_27 = arith.constant 0 : index
      %31 = vector.load %arg7[%c0_25, %c0_26, %c0_27] : memref<1x1x1xf32, #tpu.memory_space<vmem>>, vector<1x1x1xf32>
      %32 = vector.shape_cast %31 : vector<1x1x1xf32> to vector<1x1xf32>
      %33 = vector.shape_cast %30 : vector<1x1xf32> to vector<1x1x1xf32>
      tpu.vector_store %arg7[%c0_25, %c0_26, %c0_27], %33 {strides = array<i32>} : memref<1x1x1xf32, #tpu.memory_space<vmem>>, vector<1x1x1xf32>,
    } else {
    }
    return
  }
  func.func @transform_0(%arg0: i32, %arg1: i32) -> (i32, i32, i32) {
    %c0_i32 = arith.constant 0 : i32
    %c0_i32_0 = arith.constant 0 : i32
    return %arg0, %c0_i32, %arg1 : i32, i32, i32
  }
  func.func @transform_1(%arg0: i32, %arg1: i32) -> (i32, i32) {
    %c0_i32 = arith.constant 0 : i32
    %c0_i32_0 = arith.constant 0 : i32
    %c0_i32_1 = arith.constant 0 : i32
    return %c0_i32, %c0_i32_0 : i32, i32
  }
  func.func @transform_2(%arg0: i32, %arg1: i32) -> (i32, i32) {
    %c0_i32 = arith.constant 0 : i32
    %c0_i32_0 = arith.constant 0 : i32
    %c0_i32_1 = arith.constant 0 : i32
    return %c0_i32, %c0_i32_0 : i32, i32
  }
  func.func @transform_3(%arg0: i32, %arg1: i32) -> (i32, i32) {
    %c0_i32 = arith.constant 0 : i32
    %c0_i32_0 = arith.constant 0 : i32
    %c0_i32_1 = arith.constant 0 : i32
    return %c0_i32, %c0_i32_0 : i32, i32
  }
  func.func @transform_4(%arg0: i32, %arg1: i32) -> (i32, i32) {
    %c0_i32 = arith.constant 0 : i32
    %c0_i32_0 = arith.constant 0 : i32
    %c0_i32_1 = arith.constant 0 : i32
    return %c0_i32, %c0_i32_0 : i32, i32
  }
  func.func @transform_5(%arg0: i32, %arg1: i32) -> (i32, i32, i32) {
    %c0_i32 = arith.constant 0 : i32
    %c0_i32_0 = arith.constant 0 : i32
    %c0_i32_1 = arith.constant 0 : i32
    return %arg0, %c0_i32, %c0_i32_0 : i32, i32, i32
  }
}

</mosaic_0001>

<bundles_post_ra>
// kernel: tpu_custom_call.1
= control target key start
LH: loop header
LB: loop body
LE: loop exit
PB: predicated region body
PF: predicated region fallthrough
CT: control target
= control target key end

     0   :  { %s1399_s18 = smov 0   ;;  %s1401_s19 = smov 0   ;;  %s1680_s0 = inlined_call_operand.vmem [shape: f32[2,32,256], index: 0, kind: input, shape index: {}]   ;;  %s1681_s1 = inlined_call_operand.vmem [shape: f32[256,32], index: 1, kind: input, shape index: {}]   ;;  %s1682_s2 = inlined_call_operand.vmem [shape: f32[64,256], index: 2, kind: input, shape index: {}]   ;;  %s1683_s3 = inlined_call_operand.vmem [shape: f32[8,64], index: 3, kind: input, shape index: {}]   ;;  %s1684_s4 = inlined_call_operand.vmem [shape: f32[8,1], index: 4, kind: input, shape index: {}]   ;;  %s1685_s5 = inlined_call_operand.vmem [shape: f32[2,1,1], index: 5, kind: output, shape index: {}]  }
   0x1   :  { %s1403_s20 = smov 0   ;;  %s1405_s21 = smov 0  }
   0x2   :  { %s1407_s22 = smov 0   ;;  %s1409_s23 = smov 0  }
   0x3   :  { %s1411_s24 = smov 0  }
   0x4 LB: > { %s24_s25 = sadd.s32 1, %s1355_s22  ;;  %s27_s26 = sadd.s32 1, %s1359_s23  ;;  %s1363_s24 = sphi %s1411_s24, %s15_s24   ;;  %s1359_s23 = sphi %s1409_s23, %s1691_s23   ;;  %s1355_s22 = sphi %s1407_s22, %s1690_s22   ;;  %s1351_s21 = sphi %s1405_s21, %s1689_s21   ;;  %s1347_s20 = sphi %s1403_s20, %s1688_s20   ;;  %s1343_s19 = sphi %s1401_s19, %s1687_s19   ;;  %s1339_s18 = sphi %s1399_s18, %s1686_s18  }
   0x5   : > { %p25_p0 = scmp.ge.s32.totalorder %s24_s25, 2  ;;  %p43_p1 = scmp.ne.s32.totalorder %s1343_s19, %s1339_s18 }
   0x6   : > { %p44_p2 = scmp.eq.s32.totalorder %s1363_s24, 0  ;;  %s36_s30 = sadd.s32 1, %s1343_s19 }
   0x7   : > { %s1693_s25 = smov (%p25_p0, %s24_s25), 0  ;;  %s1695_s26 = smov (!%p25_p0, %s27_s26), %s1359_s23 }
   0x8   : > { %p45_p3 = por %p44_p2, %p43_p1  ;;  %p29_p4 = scmp.ge.s32.totalorder %s1695_s26, 2 }
   0x9   : > { %s32_s27 = ssub.s32 %s1355_s22, %s1693_s25  ;;  %p976_p6 = scmp.ge.s32.totalorder %s1363_s24, 4 }
   0xa   : > { %s1697_s26 = smov (%p29_p4, %s1695_s26), 0 }
   0xb   : > { %s31_s28 = ssub.s32 %s1359_s23, %s1697_s26  ;;  %191 = sbr.rel (%p976_p6) target bundleno = 26 (0x1a), region = 32 }
   0xc   : > { %s33_s29 = sor.u32 %s32_s27, %s31_s28 }
   0xd   : > { %p34_p5 = scmp.eq.s32.totalorder %s33_s29, 0 }
   0xf   : > { %s1450_s6 = scalar_select %p34_p5, %s1343_s19, %s36_s30  }
  0x12   : > { %194 = sbr.rel (!%p45_p3) target bundleno = 26 (0x1a), region = 36  ;;  %s196_s7 = sand.u32 (%p45_p3), 1, %s1343_s19  }
  0x13   : > { %s978_s8 = sshll.u32 (%p45_p3), %s1359_s23, 3  ;;  %s977_s9 = sshll.u32 (%p45_p3), %s196_s7, 5 }
  0x14   : > { %s200_s10 = sadd.s32 (%p45_p3), %s1355_s22, %s978_s8  ;;  %s198_s15 = scalar_lea.vmem (%p45_p3), [#allocation3], %s977_s9 }
  0x15   : > { %s979_s11 = sshll.u32 (%p45_p3), %s200_s10, 3 }
  0x16   : > { %s202_s14 = scalar_lea.vmem (%p45_p3), %s1680_s0, %s979_s11 }
  0x17   : > { %v236_v0 = vld [vmem:[%s202_s14] sm:$0xff] (%p45_p3)  ;;  %v238_v1 = vld [vmem:[%s202_s14 + $0x10] sm:$0xff] (%p45_p3) }
  0x18   : > { %v240_v2 = vld [vmem:[%s202_s14 + $0x20] sm:$0xff] (%p45_p3)  ;;  %237 = vst [vmem:[%s198_s15] sm:$0xff] (%p45_p3), %v236_v0  ;;  %239 = vst [vmem:[%s198_s15 + $0x8] sm:$0xff] (%p45_p3), %v238_v1  ;;  %v242_v3 = vld [vmem:[%s202_s14 + $0x30] sm:$0xff] (%p45_p3) }
  0x19   : > { %241 = vst [vmem:[%s198_s15 + $0x10] sm:$0xff] %v240_v2  ;;  %243 = vst [vmem:[%s198_s15 + $0x18] sm:$0xff] %v242_v3 }
  0x1a PF: > { %p980_p7 = scmp.ge.s32.totalorder %s1363_s24, 1  ;;  %p248_p8 = scmp.lt.s32.totalorder %s1363_s24, 5 }
  0x1c   : > { %p249_p9 = pnand %p980_p7, %p248_p8 }
  0x1d   : > { %s255_s16 = sand.u32 (!%p249_p9), 1, %s1339_s18   ;;  %p280_p10 = scmp.lt.s32.totalorder (!%p249_p9), %s1351_s21, 1 }
  0x1e   : > { %252 = sbr.rel (%p249_p9) target bundleno = 979 (0x3d3), region = 74  ;;  %s981_s17 = sshll.u32 (!%p249_p9), %s255_s16, 5 }
  0x1f   : > { %s257_s30 = scalar_lea.vmem (!%p249_p9), [#allocation3], %s981_s17  ;;  %p982_p11 = scmp.ne.s32.totalorder (!%p249_p9), %s1347_s20, 0 }
  0x25   : > { %s1699_s21 = smov (!%p280_p10, %s1351_s21), 1  ;;  %286 = sbr.rel (%p982_p11) target bundleno = 44 (0x2c), region = 82 }
  0x26   : > { %s282_s29 = scalar_lea.vmem %s1685_s5, %s1699_s21  ;;  %vm287_vm0 = vcmask (!%p982_p11), 7168   ;;  %v1365_v4 = vmov (!%p982_p11), 0.0  }
  0x27   : > { %288 = vst.msk [vmem:[#allocation2] sm:$0xff] (!%p982_p11), %vm287_vm0, %v1365_v4 }
  0x2c PF: > { %v338_v5 = vld [vmem:[%s257_s30] sm:$0xff]  ;;  %v339_v6 = vld [vmem:[%s257_s30 + $0x8] sm:$0xff]  ;;  %v340_v7 = vld [vmem:[%s257_s30 + $0x10] sm:$0xff]  ;;  %vm342_vm1 = vcmask 261120   ;;  %vm1367_vm2 = vmmov 0   ;;  %vm809_vm3 = vcmask 523264  }
  0x2d   : > { %v1195_v8 = vpack.c.bf16 %v339_v6, %v338_v5  ;;  %v341_v9 = vld [vmem:[%s257_s30 + $0x18] sm:$0xff]  ;;  %v290_v12 = vld [vmem:[%s1681_s1 + $0x8] sm:$0xff]  ;;  %v291_v13 = vld [vmem:[%s1681_s1 + $0x10] sm:$0xff]  ;;  %vm888_vm4 = vcmask 7168   ;;  %p1016_p12 = scmp.ne.s32.totalorder %s1347_s20, 1 }
  0x2e   : > { %v289_v10 = vld [vmem:[%s1681_s1] sm:$0xff]  ;;  %v1199_v11 = vpack.c.bf16 %v341_v9, %v340_v7  ;;  %v292_v14 = vld [vmem:[%s1681_s1 + $0x18] sm:$0xff]  ;;  %v294_v16 = vld [vmem:[%s1681_s1 + $0x28] sm:$0xff]  ;;  %vm905_vm5 = vcmask (!%p1016_p12), 0  }
  0x2f   : > { %1128 = vmatprep.mubr.msk.f32.mxu0 %vm342_vm1, %v289_v10  ;;  %1196 = vmatprep.subr.bf16.mxu0 %v1195_v8  ;;  %v293_v15 = vld [vmem:[%s1681_s1 + $0x20] sm:$0xff]  ;;  %v295_v17 = vld [vmem:[%s1681_s1 + $0x30] sm:$0xff]  ;;  %v296_v18 = vld [vmem:[%s1681_s1 + $0x38] sm:$0xff] }
  0x30   : > { %1198 = vmatpush3.bf16.msra.mxu0 %v1195_v8  ;;  %v297_v19 = vld [vmem:[%s1681_s1 + $0x40] sm:$0xff]  ;;  %v298_v20 = vld [vmem:[%s1681_s1 + $0x48] sm:$0xff]  ;;  %v299_v21 = vld [vmem:[%s1681_s1 + $0x50] sm:$0xff] }
  0x31   : > { %1200 = vmatprep.subr.bf16.mxu0 %v1199_v11  ;;  %v300_v22 = vld [vmem:[%s1681_s1 + $0x58] sm:$0xff]  ;;  %v301_v23 = vld [vmem:[%s1681_s1 + $0x60] sm:$0xff]  ;;  %v302_v24 = vld [vmem:[%s1681_s1 + $0x68] sm:$0xff] }
  0x32   : > { %v303_v25 = vld [vmem:[%s1681_s1 + $0x70] sm:$0xff]  ;;  %v304_v26 = vld [vmem:[%s1681_s1 + $0x78] sm:$0xff]  ;;  %v305_v27 = vld [vmem:[%s1681_s1 + $0x80] sm:$0xff] }
  0x33   : > { %v306_v28 = vld [vmem:[%s1681_s1 + $0x88] sm:$0xff]  ;;  %v307_v29 = vld [vmem:[%s1681_s1 + $0x90] sm:$0xff]  ;;  %v308_v30 = vld [vmem:[%s1681_s1 + $0x98] sm:$0xff] }
  0x34   : > { %1202 = vmatpush3.bf16.msra.mxu0 %v1199_v11  ;;  %v309_v31 = vld [vmem:[%s1681_s1 + $0xa0] sm:$0xff]  ;;  %v310_v32 = vld [vmem:[%s1681_s1 + $0xa8] sm:$0xff]  ;;  %v311_v33 = vld [vmem:[%s1681_s1 + $0xb0] sm:$0xff] }
  0x35   : > { %v312_v34 = vld [vmem:[%s1681_s1 + $0xb8] sm:$0xff]  ;;  %v313_v35 = vld [vmem:[%s1681_s1 + $0xc0] sm:$0xff]  ;;  %v314_v36 = vld [vmem:[%s1681_s1 + $0xc8] sm:$0xff] }
  0x36   : > { %v315_v37 = vld [vmem:[%s1681_s1 + $0xd0] sm:$0xff]  ;;  %v316_v38 = vld [vmem:[%s1681_s1 + $0xd8] sm:$0xff]  ;;  %v317_v39 = vld [vmem:[%s1681_s1 + $0xe0] sm:$0xff] }
  0x37   : > { %1129 = vmatmul.mubr.msk.f32.vlgmr.msra.gmra.mrb[0].mxu0 %vm342_vm1, %v290_v12  ;;  %v318_v40 = vld [vmem:[%s1681_s1 + $0xe8] sm:$0xff]  ;;  %v319_v41 = vld [vmem:[%s1681_s1 + $0xf0] sm:$0xff]  ;;  %v320_v42 = vld [vmem:[%s1681_s1 + $0xf8] sm:$0xff] }
  0x38   : > { %1131 = vmatprep.mubr.msk.f32.mxu0 %vm342_vm1, %v291_v13  ;;  %v322_v43 = vld [vmem:[%s1682_s2 + $0x8] sm:$0xff] }
  0x39   : > { %760 = vmatprep.mubr.f32.mxu1 %v322_v43 }
  0x3b   : > { %1132 = vmatmul.mubr.msk.f32.gmra.mrb[2].mxu0 %vm342_vm1, %v292_v14 }
  0x3c   : > { %1134 = vmatprep.mubr.msk.f32.mxu0 %vm342_vm1, %v293_v15 }
  0x3f   : > { %1135 = vmatmul.mubr.msk.f32.gmra.mrb[4].mxu0 %vm342_vm1, %v294_v16 }
  0x40   : > { %1137 = vmatprep.mubr.msk.f32.mxu0 %vm342_vm1, %v295_v17 }
  0x43   : > { %1138 = vmatmul.mubr.msk.f32.gmra.mrb[6].mxu0 %vm342_vm1, %v296_v18 }
  0x44   : > { %1140 = vmatprep.mubr.msk.f32.mxu0 %vm342_vm1, %v297_v19 }
  0x47   : > { %1141 = vmatmul.mubr.msk.f32.gmra.mrb[8].mxu0 %vm342_vm1, %v298_v20 }
  0x48   : > { %1143 = vmatprep.mubr.msk.f32.mxu0 %vm342_vm1, %v299_v21 }
  0x4b   : > { %1144 = vmatmul.mubr.msk.f32.gmra.mrb[10].mxu0 %vm342_vm1, %v300_v22 }
  0x4c   : > { %1146 = vmatprep.mubr.msk.f32.mxu0 %vm342_vm1, %v301_v23 }
  0x4f   : > { %1147 = vmatmul.mubr.msk.f32.gmra.mrb[12].mxu0 %vm342_vm1, %v302_v24 }
  0x50   : > { %1149 = vmatprep.mubr.msk.f32.mxu0 %vm342_vm1, %v303_v25 }
  0x53   : > { %1150 = vmatmul.mubr.msk.f32.gmra.mrb[14].mxu0 %vm342_vm1, %v304_v26 }
  0x54   : > { %1152 = vmatprep.mubr.msk.f32.mxu0 %vm342_vm1, %v305_v27 }
  0x57   : > { %1153 = vmatmul.mubr.msk.f32.gmra.mrb[16].mxu0 %vm342_vm1, %v306_v28 }
  0x58   : > { %1155 = vmatprep.mubr.msk.f32.mxu0 %vm342_vm1, %v307_v29 }
  0x5b   : > { %1156 = vmatmul.mubr.msk.f32.gmra.mrb[18].mxu0 %vm342_vm1, %v308_v30 }
  0x5c   : > { %1158 = vmatprep.mubr.msk.f32.mxu0 %vm342_vm1, %v309_v31 }
  0x5f   : > { %1159 = vmatmul.mubr.msk.f32.gmra.mrb[20].mxu0 %vm342_vm1, %v310_v32 }
  0x60   : > { %1161 = vmatprep.mubr.msk.f32.mxu0 %vm342_vm1, %v311_v33 }
  0x63   : > { %1162 = vmatmul.mubr.msk.f32.gmra.mrb[22].mxu0 %vm342_vm1, %v312_v34 }
  0x64   : > { %1164 = vmatprep.mubr.msk.f32.mxu0 %vm342_vm1, %v313_v35 }
  0x67   : > { %1165 = vmatmul.mubr.msk.f32.gmra.mrb[24].mxu0 %vm342_vm1, %v314_v36 }
  0x68   : > { %1167 = vmatprep.mubr.msk.f32.mxu0 %vm342_vm1, %v315_v37 }
  0x6b   : > { %1168 = vmatmul.mubr.msk.f32.gmra.mrb[26].mxu0 %vm342_vm1, %v316_v38 }
  0x6c   : > { %1170 = vmatprep.mubr.msk.f32.mxu0 %vm342_vm1, %v317_v39 }
  0x6f   : > { %1171 = vmatmul.mubr.msk.f32.gmra.mrb[28].mxu0 %vm342_vm1, %v318_v40 }
  0x70   : > { %1173 = vmatprep.mubr.msk.f32.mxu0 %vm342_vm1, %v319_v41 }
  0x73   : > { %1174 = vmatmul.mubr.msk.f32.gmra.mrb[30].mxu0 %vm342_vm1, %v320_v42 }
 0x10a   : > { %v1130_v44 = vpop.f32.mrb[0].mxu0 }
 0x10b   : > { %v665_v45 = vmax.f32 %v1130_v44, 0.0  ;;  %v505_v46 = vpop.f32.mrb[1].mxu0 }
 0x10c   : > { %v664_v47 = vmax.f32 %v505_v46, 0.0 }
 0x10e   : > { %v1133_v48 = vpop.f32.mrb[2].mxu0  ;;  %v1205_v49 = vpack.c.bf16 %v665_v45, %v664_v47 }
 0x10f   : > { %v667_v50 = vmax.f32 %v1133_v48, 0.0  ;;  %v515_v51 = vpop.f32.mrb[3].mxu0 }
 0x110   : > { %v666_v52 = vmax.f32 %v515_v51, 0.0 }
 0x112   : > { %v1209_v53 = vpack.c.bf16 %v667_v50, %v666_v52  ;;  %v1136_v54 = vpop.f32.mrb[4].mxu0 }
 0x113   : > { %v669_v55 = vmax.f32 %v1136_v54, 0.0  ;;  %v525_v56 = vpop.f32.mrb[5].mxu0 }
 0x114   : > { %v668_v57 = vmax.f32 %v525_v56, 0.0 }
 0x116   : > { %v1213_v58 = vpack.c.bf16 %v669_v55, %v668_v57  ;;  %v1139_v59 = vpop.f32.mrb[6].mxu0 }
 0x117   : > { %v671_v60 = vmax.f32 %v1139_v59, 0.0  ;;  %v535_v61 = vpop.f32.mrb[7].mxu0 }
 0x118   : > { %v670_v62 = vmax.f32 %v535_v61, 0.0  ;;  %v324_v61 = vld [vmem:[%s1682_s2 + $0x18] sm:$0xff] }
 0x11a   : > { %v1217_v63 = vpack.c.bf16 %v671_v60, %v670_v62  ;;  %v1142_v0 = vpop.f32.mrb[8].mxu0  ;;  %v321_v60 = vld [vmem:[%s1682_s2] sm:$0xff]  ;;  %v323_v62 = vld [vmem:[%s1682_s2 + $0x10] sm:$0xff] }
 0x11b   : > { %v673_v1 = vmax.f32 %v1142_v0, 0.0  ;;  %v545_v2 = vpop.f32.mrb[9].mxu0  ;;  %v325_v0 = vld [vmem:[%s1682_s2 + $0x20] sm:$0xff] }
 0x11c   : > { %v672_v3 = vmax.f32 %v545_v2, 0.0  ;;  %v327_v2 = vld [vmem:[%s1682_s2 + $0x30] sm:$0xff] }
 0x11e   : > { %v1221_v4 = vpack.c.bf16 %v673_v1, %v672_v3  ;;  %v1145_v5 = vpop.f32.mrb[10].mxu0  ;;  %v328_v1 = vld [vmem:[%s1682_s2 + $0x38] sm:$0xff]  ;;  %v330_v3 = vld [vmem:[%s1682_s2 + $0x48] sm:$0xff] }
 0x11f   : > { %v675_v6 = vmax.f32 %v1145_v5, 0.0  ;;  %v555_v7 = vpop.f32.mrb[11].mxu0  ;;  %v332_v5 = vld [vmem:[%s1682_s2 + $0x58] sm:$0xff] }
 0x120   : > { %v674_v8 = vmax.f32 %v555_v7, 0.0  ;;  %v334_v7 = vld [vmem:[%s1682_s2 + $0x68] sm:$0xff] }
 0x122   : > { %v1225_v9 = vpack.c.bf16 %v675_v6, %v674_v8  ;;  %v1148_v10 = vpop.f32.mrb[12].mxu0  ;;  %v331_v6 = vld [vmem:[%s1682_s2 + $0x50] sm:$0xff]  ;;  %v333_v8 = vld [vmem:[%s1682_s2 + $0x60] sm:$0xff] }
 0x123   : > { %v677_v11 = vmax.f32 %v1148_v10, 0.0  ;;  %v565_v12 = vpop.f32.mrb[13].mxu0  ;;  %v335_v10 = vld [vmem:[%s1682_s2 + $0x70] sm:$0xff] }
 0x124   : > { %v676_v13 = vmax.f32 %v565_v12, 0.0  ;;  %v1368_v12 = vmov 0.0  }
 0x126   : > { %v1229_v14 = vpack.c.bf16 %v677_v11, %v676_v13  ;;  %v1151_v15 = vpop.f32.mrb[14].mxu0  ;;  %v1366_v11 = vmov 0.0|0.0  }
 0x127   : > { %v679_v16 = vmax.f32 %v1151_v15, 0.0  ;;  %v575_v17 = vpop.f32.mrb[15].mxu0 }
 0x128   : > { %v678_v18 = vmax.f32 %v575_v17, 0.0 }
 0x12a   : > { %v1233_v19 = vpack.c.bf16 %v679_v16, %v678_v18  ;;  %v1154_v20 = vpop.f32.mrb[16].mxu0 }
 0x12b   : > { %v681_v21 = vmax.f32 %v1154_v20, 0.0  ;;  %v585_v22 = vpop.f32.mrb[17].mxu0 }
 0x12c   : > { %v680_v23 = vmax.f32 %v585_v22, 0.0 }
 0x12e   : > { %v1157_v24 = vpop.f32.mrb[18].mxu0  ;;  %v1203_v25 = vpack.c.bf16 %v681_v21, %v680_v23 }
 0x12f   : > { %v683_v26 = vmax.f32 %v1157_v24, 0.0  ;;  %v595_v27 = vpop.f32.mrb[19].mxu0 }
 0x130   : > { %v682_v28 = vmax.f32 %v595_v27, 0.0  ;;  %1204 = vmatprep.subr.bf16.mxu1 %v1203_v25 }
 0x131   : > { %1206 = vmatpush3.bf16.msra.mxu1 %v1205_v49 }
 0x132   : > { %v1207_v29 = vpack.c.bf16 %v683_v26, %v682_v28  ;;  %v1160_v30 = vpop.f32.mrb[20].mxu0 }
 0x133   : > { %v685_v31 = vmax.f32 %v1160_v30, 0.0  ;;  %v605_v32 = vpop.f32.mrb[21].mxu0 }
 0x134   : > { %v684_v33 = vmax.f32 %v605_v32, 0.0  ;;  %1208 = vmatprep.subr.bf16.mxu1 %v1207_v29 }
 0x135   : > { %1210 = vmatpush3.bf16.msra.mxu1 %v1209_v53 }
 0x136   : > { %v1211_v34 = vpack.c.bf16 %v685_v31, %v684_v33  ;;  %v1163_v35 = vpop.f32.mrb[22].mxu0 }
 0x137   : > { %v687_v36 = vmax.f32 %v1163_v35, 0.0  ;;  %v615_v37 = vpop.f32.mrb[23].mxu0 }
 0x138   : > { %v686_v38 = vmax.f32 %v615_v37, 0.0  ;;  %1212 = vmatprep.subr.bf16.mxu1 %v1211_v34 }
 0x139   : > { %1214 = vmatpush3.bf16.msra.mxu1 %v1213_v58 }
 0x13a   : > { %v1215_v39 = vpack.c.bf16 %v687_v36, %v686_v38  ;;  %v1166_v40 = vpop.f32.mrb[24].mxu0 }
 0x13b   : > { %v689_v41 = vmax.f32 %v1166_v40, 0.0  ;;  %v625_v42 = vpop.f32.mrb[25].mxu0 }
 0x13c   : > { %v688_v43 = vmax.f32 %v625_v42, 0.0  ;;  %1216 = vmatprep.subr.bf16.mxu1 %v1215_v39 }
 0x13d   : > { %1218 = vmatpush3.bf16.msra.mxu1 %v1217_v63  ;;  %v326_v63 = vld [vmem:[%s1682_s2 + $0x28] sm:$0xff] }
 0x13e   : > { %v1219_v44 = vpack.c.bf16 %v689_v41, %v688_v43  ;;  %v1169_v45 = vpop.f32.mrb[26].mxu0 }
 0x13f   : > { %v691_v46 = vmax.f32 %v1169_v45, 0.0  ;;  %v635_v47 = vpop.f32.mrb[27].mxu0 }
 0x140   : > { %v690_v48 = vmax.f32 %v635_v47, 0.0  ;;  %1220 = vmatprep.subr.bf16.mxu1 %v1219_v44 }
 0x141   : > { %1222 = vmatpush3.bf16.msra.mxu1 %v1221_v4  ;;  %v329_v4 = vld [vmem:[%s1682_s2 + $0x40] sm:$0xff] }
 0x142   : > { %v1223_v49 = vpack.c.bf16 %v691_v46, %v690_v48  ;;  %v1172_v50 = vpop.f32.mrb[28].mxu0 }
 0x143   : > { %v693_v51 = vmax.f32 %v1172_v50, 0.0  ;;  %v645_v52 = vpop.f32.mrb[29].mxu0 }
 0x144   : > { %v692_v53 = vmax.f32 %v645_v52, 0.0  ;;  %1224 = vmatprep.subr.bf16.mxu1 %v1223_v49  ;;  %v337_v49 = vld [vmem:[%s1683_s3] sm:$0xff] }
 0x145   : > { %1226 = vmatpush3.bf16.msra.mxu1 %v1225_v9  ;;  %v336_v9 = vld [vmem:[%s1682_s2 + $0x78] sm:$0xff] }
 0x146   : > { %v1227_v54 = vpack.c.bf16 %v693_v51, %v692_v53  ;;  %v1175_v55 = vpop.f32.mrb[30].mxu0  ;;  %v886_v53 = vld [vmem:[#allocation2] sm:$0xff] }
 0x147   : > { %v695_v56 = vmax.f32 %v1175_v55, 0.0  ;;  %v655_v57 = vpop.f32.mrb[31].mxu0 }
 0x148   : > { %v694_v58 = vmax.f32 %v655_v57, 0.0  ;;  %1228 = vmatprep.subr.bf16.mxu1 %v1227_v54  ;;  %v895_v57 = vld [vmem:[%s1684_s4] sm:$0xff] (!%p1016_p12) }
 0x149   : > { %1230 = vmatpush3.bf16.msra.mxu1 %v1229_v14 }
 0x14a   : > { %v1231_v59 = vpack.c.bf16 %v695_v56, %v694_v58 }
 0x14c   : > { %1232 = vmatprep.subr.bf16.mxu1 %v1231_v59 }
 0x14d   : > { %1234 = vmatpush3.bf16.msra.mxu1 %v1233_v19 }
 0x14e   : > { %1235 = vmatprep.subr.bf16.mxu1 %v1366_v11 }
 0x150   : > { %761 = vmatmul.mubr.f32.vlgmr.msra.gmra.mrb[0].mxu1 %v321_v60 }
 0x151   : > { %765 = vmatprep.mubr.f32.mxu1 %v324_v61 }
 0x154   : > { %766 = vmatmul.mubr.f32.gmra.mrb[2].mxu1 %v323_v62 }
 0x155   : > { %770 = vmatprep.mubr.f32.mxu1 %v326_v63 }
 0x158   : > { %771 = vmatmul.mubr.f32.gmra.mrb[4].mxu1 %v325_v0 }
 0x159   : > { %775 = vmatprep.mubr.f32.mxu1 %v328_v1 }
 0x15c   : > { %776 = vmatmul.mubr.f32.gmra.mrb[6].mxu1 %v327_v2 }
 0x15d   : > { %780 = vmatprep.mubr.f32.mxu1 %v330_v3 }
 0x160   : > { %781 = vmatmul.mubr.f32.gmra.mrb[8].mxu1 %v329_v4 }
 0x161   : > { %785 = vmatprep.mubr.f32.mxu1 %v332_v5 }
 0x164   : > { %786 = vmatmul.mubr.f32.gmra.mrb[10].mxu1 %v331_v6 }
 0x165   : > { %790 = vmatprep.mubr.f32.mxu1 %v334_v7 }
 0x168   : > { %791 = vmatmul.mubr.f32.gmra.mrb[12].mxu1 %v333_v8 }
 0x169   : > { %795 = vmatprep.mubr.f32.mxu1 %v336_v9 }
 0x16c   : > { %796 = vmatmul.mubr.f32.gmra.mrb[14].mxu1 %v335_v10 }
 0x16d   : > { %1192 = vmatprep.mubr.msk.f32.mxu1 %vm1367_vm2, %v1368_v12 }
 0x223   : > { %v1087_v13 = vpop.f32.mrb[0].mxu1 }
 0x224   : > { %v1088_v14 = vpop.f32.mrb[1].mxu1 }
 0x225   : > { %v1089_v15 = vadd.f32 %v1088_v14, %v1087_v13 }
 0x227   : > { %v1090_v16 = vpop.f32.mrb[2].mxu1  ;;  %v801_v19 = vmax.f32 %v1089_v15, 0.0 }
 0x228   : > { %v1091_v17 = vpop.f32.mrb[3].mxu1 }
 0x229   : > { %v1092_v18 = vadd.f32 %v1091_v17, %v1090_v16 }
 0x22b   : > { %v802_v20 = vmax.f32 %v1092_v18, 0.0  ;;  %v1093_v21 = vpop.f32.mrb[4].mxu1 }
 0x22c   : > { %v1094_v22 = vpop.f32.mrb[5].mxu1 }
 0x22d   : > { %v1236_v23 = vpack.c.bf16 %v802_v20, %v801_v19  ;;  %v1095_v24 = vadd.f32 %v1094_v22, %v1093_v21 }
 0x22f   : > { %v1096_v25 = vpop.f32.mrb[6].mxu1  ;;  %1237 = vmatpush3.bf16.msra.mxu1 %v1236_v23  ;;  %v803_v28 = vmax.f32 %v1095_v24, 0.0 }
 0x230   : > { %v1097_v26 = vpop.f32.mrb[7].mxu1  ;;  %1238 = vmatprep.subr.bf16.mxu1 %v1366_v11 }
 0x231   : > { %v1098_v27 = vadd.f32 %v1097_v26, %v1096_v25 }
 0x233   : > { %v804_v29 = vmax.f32 %v1098_v27, 0.0  ;;  %v1099_v30 = vpop.f32.mrb[8].mxu1 }
 0x234   : > { %v1100_v31 = vpop.f32.mrb[9].mxu1 }
 0x235   : > { %v1239_v32 = vpack.c.bf16 %v804_v29, %v803_v28  ;;  %v1101_v33 = vadd.f32 %v1100_v31, %v1099_v30 }
 0x237   : > { %v1102_v34 = vpop.f32.mrb[10].mxu1  ;;  %1240 = vmatpush3.bf16.msra.mxu1 %v1239_v32  ;;  %v805_v37 = vmax.f32 %v1101_v33, 0.0 }
 0x238   : > { %v1103_v35 = vpop.f32.mrb[11].mxu1  ;;  %1241 = vmatprep.subr.bf16.mxu1 %v1366_v11 }
 0x239   : > { %v1104_v36 = vadd.f32 %v1103_v35, %v1102_v34 }
 0x23b   : > { %v806_v38 = vmax.f32 %v1104_v36, 0.0  ;;  %v1105_v39 = vpop.f32.mrb[12].mxu1 }
 0x23c   : > { %v1106_v40 = vpop.f32.mrb[13].mxu1 }
 0x23d   : > { %v1242_v41 = vpack.c.bf16 %v806_v38, %v805_v37  ;;  %v1107_v42 = vadd.f32 %v1106_v40, %v1105_v39 }
 0x23f   : > { %v1108_v43 = vpop.f32.mrb[14].mxu1  ;;  %1243 = vmatpush3.bf16.msra.mxu1 %v1242_v41  ;;  %v807_v46 = vmax.f32 %v1107_v42, 0.0 }
 0x240   : > { %v1109_v44 = vpop.f32.mrb[15].mxu1  ;;  %1244 = vmatprep.subr.bf16.mxu1 %v1366_v11 }
 0x241   : > { %v1110_v45 = vadd.f32 %v1109_v44, %v1108_v43 }
 0x243   : > { %v808_v47 = vmax.f32 %v1110_v45, 0.0 }
 0x245   : > { %v1245_v48 = vpack.c.bf16 %v808_v47, %v807_v46 }
 0x247   : > { %1246 = vmatpush3.bf16.msra.mxu1 %v1245_v48 }
 0x24a   : > { %1193 = vmatmul.mubr.msk.f32.vlgmr.msra.gmra.mrb[16].mxu1 %vm809_vm3, %v337_v49 }
 0x31d   : > { %v879_v50 = vpop.f32.mrb[16].mxu1 }
 0x31e   : > { %v1194_v51 = vpop.f32.mrb[17].mxu1  ;;  %v883_v52 = vmax.f32 %v879_v50, 0.0 }
 0x320   : > { %884 = vadd.xlane.f32.xlu0 %v883_v52 }
 0x3aa   : > { %893 = sbr.rel (%p1016_p12) target bundleno = 979 (0x3d3), region = 86 }
 0x3ad   : > { %v885_v54 = vpop.xlane.xlu0 %884 }
 0x3ae   : > { %v887_v55 = vadd.f32 %v886_v53, %v885_v54 }
 0x3b0   : > { %889 = vst.msk [vmem:[#allocation2] sm:$0xff] %vm888_vm4, %v887_v55 }
 0x3b7   : > { %v894_v56 = vld [vmem:[#allocation2] sm:$0xff] }
 0x3b8   : > { %v896_v58 = vmul.f32 %v895_v57, %v894_v56 }
 0x3ba   : > { %v897_v59 = vsel %vm888_vm4, %v896_v58, 0.0 }
 0x3bb   : > { %v898_v60 = vrot.slane %v897_v59, 4 }
 0x3bd   : > { %v899_v61 = vadd.f32 %v898_v60, %v897_v59 }
 0x3bf   : > { %v900_v62 = vrot.slane %v899_v61, 2 }
 0x3c1   : > { %v901_v63 = vadd.f32 %v900_v62, %v899_v61 }
 0x3c3   : > { %v902_v0 = vrot.slane %v901_v63, 1 }
 0x3c5   : > { %v903_v1 = vadd.f32 %v902_v0, %v901_v63 }
 0x3c7   : > { %1307 = vtanh.f32 %v903_v1 }
 0x3d1   : > { %v1308_v2 = vpop.eup %1307 }
 0x3d2   : > { %906 = vst.msk [vmem:[%s282_s29] sm:$0x1] %vm905_vm5, %v1308_v2 }
 0x3d3 PF: > { %s15_s24 = sadd.s32 1, %s1363_s24   ;;  %s1686_s18 = smov %s1343_s19 }
 0x3d4   : > { %p12_p13 = scmp.ge.s32.totalorder %s15_s24, 6   ;;  %s1687_s19 = smov %s1450_s6 }
 0x3d5   : > { %s1688_s20 = smov %s1355_s22  ;;  %s1689_s21 = smov %s1359_s23 }
 0x3d6   : > { %s1690_s22 = smov %s1693_s25  ;;  %s1691_s23 = smov %s1697_s26 }
 0x3d7   :  { %14 = sbr.rel (!%p12_p13) target bundleno = 4 (0x4), region = 121 }

</bundles_post_ra>
